<compile_context>
chip_gen: v7x
topology: tpu7x:2x2x1
jax: 0.10.0
libtpu: 0.0.40
codegen_flags: <defaults>
</compile_context>

<pallas_src>
import functools

import jax
import jax.numpy as jnp
from jax.experimental import pallas as pl
from jax.experimental.pallas import tpu as pltpu


# ----------------------------------------------------------------------------
# Hardware helpers
# ----------------------------------------------------------------------------
def _device_kind() -> str:
    try:
        return jax.devices()[0].device_kind.lower()
    except Exception:  # pragma: no cover
        return ""


def _is_v7() -> bool:
    return "v7" in _device_kind()


def _has_bf16_valu() -> bool:
    # v6e and v7x have a bf16 VALU; v5e does not.
    k = _device_kind()
    return ("v6" in k) or ("v7" in k)


def _round_up(x, m):
    return ((x + m - 1) // m) * m


def _round_down(x, m):
    return (x // m) * m


# ----------------------------------------------------------------------------
# Kernel
# ----------------------------------------------------------------------------
def _h2tv2_kernel(x1_ref, x2_ref, dis_sel_ref, out_ref, *, compute_dtype):
    # dis_sel_ref: (TILE_B, 1) f32 = dis[b, y1[b]] for each row of this tile.
    # The p1 math touches only TILE_B elements -> always done in f32.
    dis_sel = dis_sel_ref[...]
    p1 = (1.0 / (1.0 + dis_sel) - 0.5) * 0.8 + 0.6      # == 0.8/(1+dis) + 0.2
    p1 = p1.astype(compute_dtype)

    x1 = x1_ref[...].astype(compute_dtype)
    x2 = x2_ref[...].astype(compute_dtype)
    # lerp form: out = x2 + (x1 - x2) * p1  (== x1*p1 + x2*(1-p1))
    out_ref[...] = (x2 + (x1 - x2) * p1).astype(out_ref.dtype)


# ----------------------------------------------------------------------------
# Block-size selection (budgeted against vmem_limit_bytes)
# ----------------------------------------------------------------------------
def _pick_tiles(B, D, x1_dtype, x2_dtype, out_dtype, compute_dtype,
                vmem_limit_bytes):
    budget = int(0.75 * vmem_limit_bytes)
    i1 = jnp.dtype(x1_dtype).itemsize
    i2 = jnp.dtype(x2_dtype).itemsize
    io = jnp.dtype(out_dtype).itemsize
    ic = jnp.dtype(compute_dtype).itemsize
    # 2x: double-buffered pipeline blocks for x1/x2/out; +3*ic: in-kernel
    # temporaries held in the compute dtype (conservative).
    per_elem = 2 * (i1 + i2 + io) + 3 * ic
    max_elems = max(budget // per_elem, 8 * 128)

    d_full = max(_round_up(D, 128), 128)        # lane-padded footprint of full D
    b_full = max(_round_up(B, 8), 8)            # sublane-padded footprint of full B

    rows_if_full_d = max_elems // d_full
    if rows_if_full_d >= 8:
        # Keep the full feature dim in one block; spend the rest on rows.
        tile_d = D
        if rows_if_full_d >= b_full:
            tile_b = B                           # whole batch in one row-block
        else:
            tile_b = max(8, _round_down(rows_if_full_d, 8))
    else:
        # Very large D: tile the feature axis too (128-lane multiples).
        tile_b = min(B, 8)
        tile_d = max(128, _round_down(max_elems // 8, 128))
        if tile_d >= D:
            tile_d = D
    return int(tile_b), int(tile_d)


# ----------------------------------------------------------------------------
# Public entry point
# ----------------------------------------------------------------------------
def h2tv2_forward(x1, x2, dis, y1, y2=None, *, tile_b=None, tile_d=None,
                  min_pallas_bytes=2 * 1024 * 1024, force_pallas=False):
    """Pallas implementation of H2Tv2.forward.

    x1, x2 : (B, D) float inputs (kept in their native dtype)
    dis    : (B, C) distances
    y1     : (B,)   int class indices in [0, C)
    y2     : unused (the reference forward never reads it)
    """
    del y2  # API parity only
    B, D = x1.shape
    out_dtype = x1.dtype

    # Gather first (B elements), cast second: no (B, C) f32 materialization.
    dis_sel = jnp.take_along_axis(
        dis, y1.astype(jnp.int32)[:, None], axis=1).astype(jnp.float32)  # (B, 1)

    total_bytes = (x1.size * x1.dtype.itemsize + x2.size * x2.dtype.itemsize
                   + B * D * jnp.dtype(out_dtype).itemsize)
    if not force_pallas and total_bytes < min_pallas_bytes:
        # Tiny problem: a fused jnp expression beats pallas_call fixed cost.
        p1 = (1.0 / (1.0 + dis_sel) - 0.5) * 0.8 + 0.6
        return (x1.astype(jnp.float32) * p1
                + x2.astype(jnp.float32) * (1.0 - p1)).astype(out_dtype)

    # bf16 VALU on v6e/v7x -> blend natively in bf16; v5e / f32 inputs use f32.
    if jnp.dtype(out_dtype) == jnp.bfloat16 and _has_bf16_valu():
        compute_dtype = jnp.bfloat16
    else:
        compute_dtype = jnp.float32

    # v7x: 64 MiB physical VMEM per TC -> cap scoped limit at 48 MiB.
    vmem_limit = (48 if _is_v7() else 64) * 1024 * 1024

    auto_tb, auto_td = _pick_tiles(B, D, x1.dtype, x2.dtype, out_dtype,
                                   compute_dtype, vmem_limit)
    tile_b = auto_tb if tile_b is None else int(tile_b)
    tile_d = auto_td if tile_d is None else int(tile_d)

    grid = (pl.cdiv(B, tile_b), pl.cdiv(D, tile_d))
    kernel = functools.partial(_h2tv2_kernel, compute_dtype=compute_dtype)

    def call(dim_sems):
        return pl.pallas_call(
            kernel,
            out_shape=jax.ShapeDtypeStruct((B, D), out_dtype),
            grid=grid,
            in_specs=[
                pl.BlockSpec((tile_b, tile_d), lambda i, j: (i, j)),   # x1
                pl.BlockSpec((tile_b, tile_d), lambda i, j: (i, j)),   # x2
                pl.BlockSpec((tile_b, 1), lambda i, j: (i, 0)),        # dis[b, y1[b]]
            ],
            out_specs=pl.BlockSpec((tile_b, tile_d), lambda i, j: (i, j)),
            compiler_params=pltpu.CompilerParams(
                dimension_semantics=dim_sems,
                vmem_limit_bytes=vmem_limit,
            ),
        )(x1, x2, dis_sel)

    if _is_v7():
        # Shard the batch axis across v7x's two TensorCores; fall back to the
        # portable semantics if this build rejects core-parallel grids.
        try:
            return call((pltpu.CORE_PARALLEL, pltpu.PARALLEL))
        except Exception:  # pragma: no cover
            pass
    return call(("parallel", "parallel"))


# ----------------------------------------------------------------------------
# Pure-JAX reference (mirrors the PyTorch module)
# ----------------------------------------------------------------------------
def _reference(x1, x2, dis, y1):
    d = 1.0 / (1.0 + dis)
    p = (d - 0.5) / 0.5 * 0.4 + 0.6
    one_hot1 = jax.nn.one_hot(y1, p.shape[1], dtype=jnp.float32)
    p1 = (p * one_hot1).sum(axis=1)
    p2 = 1.0 - p1
    return x1 * p1[:, None] + x2 * p2[:, None]


if __name__ == "__main__":
    key = jax.random.PRNGKey(0)
    k1, k2, k3, k4, k5 = jax.random.split(key, 5)

    # Small demo shapes consistent with the module: batch=8, hidden=128, classes=16.
    B, D, C = 8, 128, 16
    x1 = jax.random.normal(k1, (B, D), dtype=jnp.float32)
    x2 = jax.random.normal(k2, (B, D), dtype=jnp.float32)
    dis = jnp.abs(jax.random.normal(k3, (B, C), dtype=jnp.float32))
    y1 = jax.random.randint(k4, (B,), 0, C, dtype=jnp.int32)
    y2 = jax.random.randint(k5, (B,), 0, C, dtype=jnp.int32)

    out = jax.block_until_ready(
        h2tv2_forward(x1, x2, dis, y1, y2, force_pallas=True))
    ref = _reference(x1, x2, dis, y1)
    assert out.shape == (B, D)
    assert jnp.allclose(out, ref, atol=1e-5, rtol=1e-5), "mismatch vs reference"

    # Multi-block 2-D grid with a ragged batch remainder (no wrapper padding).
    B2, D2, C2 = 36, 256, 10
    kk = jax.random.split(k5, 4)
    x1b = jax.random.normal(kk[0], (B2, D2), dtype=jnp.float32)
    x2b = jax.random.normal(kk[1], (B2, D2), dtype=jnp.float32)
    disb = jnp.abs(jax.random.normal(kk[2], (B2, C2), dtype=jnp.float32))
    y1b = jax.random.randint(kk[3], (B2,), 0, C2, dtype=jnp.int32)
    outb = jax.block_until_ready(
        h2tv2_forward(x1b, x2b, disb, y1b, None,
                      tile_b=16, tile_d=128, force_pallas=True))
    refb = _reference(x1b, x2b, disb, y1b)
    assert jnp.allclose(outb, refb, atol=1e-5, rtol=1e-5), "tiled mismatch"

    # Auto-tiled / small-problem fallback path (pure jnp for tiny shapes).
    outc = jax.block_until_ready(h2tv2_forward(x1, x2, dis, y1, y2))
    assert jnp.allclose(outc, ref, atol=1e-5, rtol=1e-5), "fallback mismatch"

    print("KERNEL_OK")
</pallas_src>

<mosaic_0001>
module attributes {stable_mosaic.version = 11 : i64} {
  func.func @_h2tv2_kernel(%arg0: i32, %arg1: i32, %arg2: memref<8x128xf32, #tpu.memory_space<vmem>>, %arg3: memref<8x128xf32, #tpu.memory_space<vmem>>, %arg4: memref<8x1xf32, #tpu.memory_space<vmem>>, %arg5: memref<8x128xf32, #tpu.memory_space<vmem>>) attributes {dimension_semantics = [#tpu.dimension_semantics<parallel>, #tpu.dimension_semantics<parallel>], iteration_bounds = array<i64: 1, 1>, scalar_prefetch = 0 : i64, scratch_operands = 0 : i64, tpu.core_type = #tpu.core_type<tc>, window_params = [{transform_indices = @transform_0, window_bounds = array<i64: 8, 128>}, {transform_indices = @transform_1, window_bounds = array<i64: 8, 128>}, {transform_indices = @transform_2, window_bounds = array<i64: 8, 1>}, {transform_indices = @transform_3, window_bounds = array<i64: 8, 128>}]} {
    %c0 = arith.constant 0 : index
    %c0_0 = arith.constant 0 : index
    %0 = vector.load %arg4[%c0, %c0_0] : memref<8x1xf32, #tpu.memory_space<vmem>>, vector<8x1xf32>
    %cst = arith.constant 1.000000e+00 : f32
    %1 = vector.broadcast %cst : f32 to vector<8x1xf32>
    %2 = arith.addf %1, %0 : vector<8x1xf32>
    %cst_1 = arith.constant 1.000000e+00 : f32
    %3 = vector.broadcast %cst_1 : f32 to vector<8x1xf32>
    %4 = arith.divf %3, %2 : vector<8x1xf32>
    %cst_2 = arith.constant 5.000000e-01 : f32
    %5 = vector.broadcast %cst_2 : f32 to vector<8x1xf32>
    %6 = arith.subf %4, %5 : vector<8x1xf32>
    %cst_3 = arith.constant 8.000000e-01 : f32
    %7 = vector.broadcast %cst_3 : f32 to vector<8x1xf32>
    %8 = arith.mulf %6, %7 : vector<8x1xf32>
    %cst_4 = arith.constant 6.000000e-01 : f32
    %9 = vector.broadcast %cst_4 : f32 to vector<8x1xf32>
    %10 = arith.addf %8, %9 : vector<8x1xf32>
    %c0_5 = arith.constant 0 : index
    %c0_6 = arith.constant 0 : index
    %11 = vector.load %arg2[%c0_5, %c0_6] : memref<8x128xf32, #tpu.memory_space<vmem>>, vector<8x128xf32>
    %c0_7 = arith.constant 0 : index
    %c0_8 = arith.constant 0 : index
    %12 = vector.load %arg3[%c0_7, %c0_8] : memref<8x128xf32, #tpu.memory_space<vmem>>, vector<8x128xf32>
    %13 = arith.subf %11, %12 : vector<8x128xf32>
    %14 = vector.broadcast %10 : vector<8x1xf32> to vector<8x128xf32>
    %15 = arith.mulf %13, %14 : vector<8x128xf32>
    %16 = arith.addf %12, %15 : vector<8x128xf32>
    %c0_9 = arith.constant 0 : index
    %c0_10 = arith.constant 0 : index
    %17 = vector.load %arg5[%c0_9, %c0_10] : memref<8x128xf32, #tpu.memory_space<vmem>>, vector<8x128xf32>
    tpu.vector_store %arg5[%c0_9, %c0_10], %16 {strides = array<i32>} : memref<8x128xf32, #tpu.memory_space<vmem>>, vector<8x128xf32>,
    return
  }
  func.func @transform_0(%arg0: i32, %arg1: i32) -> (i32, i32) {
    %c0_i32 = arith.constant 0 : i32
    return %arg0, %arg1 : i32, i32
  }
  func.func @transform_1(%arg0: i32, %arg1: i32) -> (i32, i32) {
    %c0_i32 = arith.constant 0 : i32
    return %arg0, %arg1 : i32, i32
  }
  func.func @transform_2(%arg0: i32, %arg1: i32) -> (i32, i32) {
    %c0_i32 = arith.constant 0 : i32
    %c0_i32_0 = arith.constant 0 : i32
    return %arg0, %c0_i32 : i32, i32
  }
  func.func @transform_3(%arg0: i32, %arg1: i32) -> (i32, i32) {
    %c0_i32 = arith.constant 0 : i32
    return %arg0, %arg1 : i32, i32
  }
}

</mosaic_0001>

<bundles_post_ra>
// kernel: tpu_custom_call.1
= control target key start
LH: loop header
LB: loop body
LE: loop exit
PB: predicated region body
PF: predicated region fallthrough
CT: control target
= control target key end

     0   :  { %8 = vsyncpa [#allocation3], 0  ;;  %s260_s0 = inlined_call_operand.hbm [shape: f32[8,128], index: 0, kind: input, shape index: {}]   ;;  %s261_s1 = inlined_call_operand.hbm [shape: f32[8,128], index: 1, kind: input, shape index: {}]   ;;  %s262_s2 = inlined_call_operand.hbm [shape: f32[8,1], index: 2, kind: input, shape index: {}]   ;;  %s263_s3 = inlined_call_operand.hbm [shape: f32[8,128], index: 3, kind: output, shape index: {}]  }
   0x1   :  { %9 = vsyncpa [#allocation6], 0 }
   0x2   :  { %10 = vsyncpa [#allocation4], 0  ;;  %s187_s12 = smov [#allocation5]   ;;  %s188_s14 = smov [#allocation2]  }
   0x3   :  { %s27_s13 = sshll.u32 %s187_s12, 4  ;;  %s17_s15 = sshll.u32 %s188_s14, 4  ;;  %s28_s13 = int_to_ptr.vmem [resolvable:$true] %s27_s13  ;;  %s18_s15 = int_to_ptr.vmem [resolvable:$true] %s17_s15 }
   0x4   :  { %s93_s18 = scalar_lea.hbm %s261_s1, 128 }
   0x5   :  { %p94_p0 = scmp.ne.s32.totalorder %s261_s1, %s93_s18  ;;  %p97_p1 = scmp.lt.u32.totalorder %s93_s18, %s261_s1 }
   0x7   :  { %p99_p2 = pnand %p97_p1, %p94_p0 }
   0x9   :  { %102 = shalt.err (!%p99_p2)
}
   0xa   :  { %s103_s23 = scalar_lea.vmem %s28_s13, 128  ;;  %p108_p4 = scmp.lt.s32.totalorder %s28_s13, %s28_s13 }
   0xb   :  { %p104_p3 = scmp.ne.s32.totalorder %s28_s13, %s103_s23  ;;  %p109_p5 = scmp.lt.s32.totalorder %s103_s23, %s103_s23 }
   0xd   :  { %p110_p6 = por %p109_p5, %p108_p4 }
   0xf   :  { %p111_p7 = pnand %p110_p6, %p104_p3 }
  0x11   :  { %114 = shalt.err (!%p111_p7)
}
  0x12   :  { %30 = dma.hbm_to_vmem [thread:$0]  %s261_s1, 128, %s28_s13, [#allocation6]  }
  0x13   :  { %s115_s28 = scalar_lea.hbm %s260_s0, 128 }
  0x14   :  { %p116_p8 = scmp.ne.s32.totalorder %s260_s0, %s115_s28  ;;  %p119_p9 = scmp.lt.u32.totalorder %s115_s28, %s260_s0 }
  0x16   :  { %p121_p10 = pnand %p119_p9, %p116_p8 }
  0x18   :  { %124 = shalt.err (!%p121_p10)
}
  0x19   :  { %s125_s6 = scalar_lea.vmem %s18_s15, 128  ;;  %p130_p12 = scmp.lt.s32.totalorder %s18_s15, %s18_s15 }
  0x1a   :  { %p126_p11 = scmp.ne.s32.totalorder %s18_s15, %s125_s6  ;;  %p131_p13 = scmp.lt.s32.totalorder %s125_s6, %s125_s6 }
  0x1c   :  { %p132_p0 = por %p131_p13, %p130_p12 }
  0x1e   :  { %p133_p1 = pnand %p132_p0, %p126_p11 }
  0x20   :  { %136 = shalt.err (!%p133_p1)
}
  0x21   :  { %20 = dma.hbm_to_vmem [thread:$0]  %s260_s0, 128, %s18_s15, [#allocation3]  }
  0x22   :  { %s189_s8 = smov [#allocation7]   ;;  %s137_s12 = scalar_lea.hbm %s262_s2, 128 }
  0x23   :  { %s37_s9 = sshll.u32 %s189_s8, 4  ;;  %p138_p2 = scmp.ne.s32.totalorder %s262_s2, %s137_s12  ;;  %s38_s9 = int_to_ptr.vmem [resolvable:$true] %s37_s9 }
  0x24   :  { %p141_p3 = scmp.lt.u32.totalorder %s137_s12, %s262_s2 }
  0x26   :  { %p143_p4 = pnand %p141_p3, %p138_p2 }
  0x28   :  { %146 = shalt.err (!%p143_p4)
}
  0x29   :  { %s147_s18 = scalar_lea.vmem %s38_s9, 128  ;;  %p152_p6 = scmp.lt.s32.totalorder %s38_s9, %s38_s9 }
  0x2a   :  { %p148_p5 = scmp.ne.s32.totalorder %s38_s9, %s147_s18  ;;  %p153_p7 = scmp.lt.s32.totalorder %s147_s18, %s147_s18 }
  0x2c   :  { %p154_p8 = por %p153_p7, %p152_p6 }
  0x2e   :  { %p155_p9 = pnand %p154_p8, %p148_p5 }
  0x30   :  { %158 = shalt.err (!%p155_p9)
}
  0x31   :  { %40 = dma.hbm_to_vmem [thread:$0]  %s262_s2, 128, %s38_s9, [#allocation6]  }
  0x32   :  { %181 = dma.done.wait [#allocation3], 128  }
  0x33   :  { %182 = vsyncadd [#allocation3], 4294967168 }
  0x34   :  { %183 = dma.done.wait [#allocation6], 256  }
  0x35   :  { %184 = vsyncadd [#allocation6], 4294967040  ;;  %v190_v0 = vmov 0   ;;  %v50_v1 = vld [vmem:[#allocation7] sm:$0xff]  ;;  %v57_v7 = vld [vmem:[#allocation2] sm:$0xff]  ;;  %s191_s19 = smov [#allocation8]  }
  0x36   :  { %90 = vset.pattern.permute.xlu0 %v190_v0  ;;  %v51_v2 = vadd.f32 1.0, %v50_v1  ;;  %v58_v8 = vld [vmem:[#allocation5] sm:$0xff]  ;;  %s74_s2 = sshll.u32 %s191_s19, 4  ;;  %s75_s2 = int_to_ptr.vmem [resolvable:$true] %s74_s2 }
  0x37   :  { %v59_v9 = vsub.f32 %v57_v7, %v58_v8  ;;  %s159_s20 = scalar_lea.vmem %s75_s2, 128  ;;  %p164_p11 = scmp.lt.s32.totalorder %s75_s2, %s75_s2 }
  0x38   :  { %91 = vrcp.f32 %v51_v2  ;;  %p160_p10 = scmp.ne.s32.totalorder %s75_s2, %s159_s20  ;;  %p165_p12 = scmp.lt.s32.totalorder %s159_s20, %s159_s20 }
  0x3a   :  { %p166_p13 = por %p165_p12, %p164_p11 }
  0x3c   :  { %p167_p0 = pnand %p166_p13, %p160_p10 }
  0x42   :  { %v92_v3 = vpop.eup %91 }
  0x43   :  { %v84_v4 = vadd.f32 -0.5, %v92_v3 }
  0x45   :  { %v55_v5 = vmul.f32 0.8, %v84_v4 }
  0x47   :  { %v56_v6 = vadd.f32 0.6, %v55_v5 }
  0x49   :  { %62 = vperm.xlu0 %90, %v56_v6  }
  0xc8   :  { %v63_v10 = vpop.permute.xlu0 %62 }
  0xc9   :  { %v65_v11 = vmul.f32 %v63_v10, %v59_v9 }
  0xcb   :  { %v66_v12 = vadd.f32 %v65_v11, %v58_v8 }
  0xcd   :  { %67 = vst [vmem:[#allocation8] sm:$0xff] %v66_v12 }
  0xce   :  { %170 = shalt.err (!%p167_p0)
}
  0xcf   :  { %s171_s23 = scalar_lea.hbm %s263_s3, 128 }
  0xd0   :  { %p172_p1 = scmp.ne.s32.totalorder %s263_s3, %s171_s23  ;;  %p175_p2 = scmp.lt.u32.totalorder %s171_s23, %s263_s3 }
  0xd2   :  { %p177_p3 = pnand %p175_p2, %p172_p1 }
  0xd4   :  { %180 = shalt.err (!%p177_p3)
}
  0xd5   :  { %77 = dma.vmem_to_hbm [thread:$0]  %s75_s2, 128, %s263_s3, [#allocation4]  }
  0xd6   :  { %185 = dma.done.wait [#allocation4], 128  }
  0xd7   :  { %186 = vsyncadd [#allocation4], 4294967168 }
  0xd8   :  { %81 = vsyncpa [#allocation3], 1 }
  0xd9   :  { %82 = vsyncpa [#allocation6], 1 }
  0xda   :  { %83 = vsyncpa [#allocation4], 1 }

</bundles_post_ra>
